<compile_context>
chip_gen: v7x
topology: tpu7x:2x2x1
jax: 0.10.0
libtpu: 0.0.40
codegen_flags: <defaults>
</compile_context>

<pallas_src>
import functools

import jax
import jax.numpy as jnp
from jax import lax
from jax.experimental import pallas as pl
from jax.experimental.pallas import tpu as pltpu

IN_DIM = 4      # CartPole-like state dimension
LANE = 128      # TPU lane width
CHUNK = 512     # inner lane-chunk size (caps vreg pressure of h = [64, chunk])


def _round_up(x, m):
    return (x + m - 1) // m * m


def _default_compute_dtype():
    """bf16 on v6e/v7x (bf16 VPU), f32 on v5e/older or unknown devices."""
    try:
        kind = jax.devices()[0].device_kind.lower()
    except Exception:  # pragma: no cover - defensive
        return jnp.float32
    if ("v6" in kind) or ("v7" in kind) or ("7x" in kind):
        return jnp.bfloat16
    return jnp.float32


def _choose_tiles(batch, max_tile_b):
    """Pick (tile_b, b_pad, chunk): lane-multiple tiles, >=2 grid steps when big."""
    b128 = _round_up(batch, LANE)
    if b128 <= CHUNK:
        # Tiny batch: single tile, single chunk.
        return b128, b128, b128
    units = -(-b128 // CHUNK)                       # number of 512-lane units
    units_per_tile = max(1, min(max_tile_b // CHUNK, -(-units // 2)))  # >=2 tiles
    tile_b = units_per_tile * CHUNK
    b_pad = _round_up(b128, tile_b)
    return tile_b, b_pad, CHUNK


def _make_policy_kernel(hidden, tile_b, chunk, compute_dtype):
    n_chunks = tile_b // chunk

    def kernel(s_ref, p_ref, o_ref):
        # s_ref: [IN_DIM, tile_b]  states (batch on the lane axis), compute_dtype
        # p_ref: [hidden, 8] f32   packed params: [:,0:4]=W1^T, [:,4]=b1, [:,5]=w2, [:,6]=b2
        # o_ref: [1, tile_b] f32   tanh output, lane-dense

        # Hoist parameter column reads / casts above the chunk loop (no re-broadcast
        # per iteration; JAX does not CSE broadcast_in_dim).
        w1_cols = [p_ref[:, k:k + 1].astype(compute_dtype) for k in range(IN_DIM)]  # [H,1]
        b1_col = p_ref[:, IN_DIM:IN_DIM + 1].astype(compute_dtype)                  # [H,1]
        w2_col = p_ref[:, IN_DIM + 1:IN_DIM + 2]                                    # [H,1] f32
        b2_val = p_ref[0:1, IN_DIM + 2:IN_DIM + 3]                                  # [1,1] f32

        def body(c, carry):
            off = pl.multiple_of(c * chunk, chunk)
            sc = s_ref[:, pl.ds(off, chunk)]                     # [IN_DIM, chunk]

            # ---- Layer 1: h = W1^T s + b1, ReLU.  K=4 unrolled broadcast FMAs (VPU).
            h = w1_cols[0] * sc[0:1, :]                          # [H, chunk]
            for k in range(1, IN_DIM):
                h = h + w1_cols[k] * sc[k:k + 1, :]
            h = jnp.maximum(h + b1_col, 0.0)

            # ---- Layer 2 (f32): out = w2^T h + b2; VPU multiply + XLU sublane reduce.
            out = jnp.sum(h.astype(jnp.float32) * w2_col, axis=0, keepdims=True)
            out = out + b2_val                                   # [1, chunk]
            o_ref[:, pl.ds(off, chunk)] = jnp.tanh(out).astype(o_ref.dtype)
            return carry

        lax.fori_loop(0, n_chunks, body, 0, unroll=True)

    return kernel


def pack_params(w1, b1, w2, b2):
    """Pack all parameters into a single [H, 8] f32 matrix.

    Call ONCE per parameter update (outside the per-step hot path).
    Contract: w1 [4, H], b1 with H elements, w2 with H elements, b2 scalar-like.
    """
    in_dim, hidden = w1.shape
    assert in_dim == IN_DIM, f"expected w1 of shape [4, H], got {w1.shape}"
    b1 = jnp.asarray(b1).reshape(-1)
    w2 = jnp.asarray(w2).reshape(-1)
    b2 = jnp.asarray(b2).reshape(-1)
    assert b1.shape[0] == hidden and w2.shape[0] == hidden and b2.shape[0] == 1

    p = jnp.zeros((hidden, 8), jnp.float32)
    p = p.at[:, 0:IN_DIM].set(w1.T.astype(jnp.float32))       # W1^T      [H, 4]
    p = p.at[:, IN_DIM].set(b1.astype(jnp.float32))           # b1        [H]
    p = p.at[:, IN_DIM + 1].set(w2.astype(jnp.float32))       # w2 (H->1) [H]
    p = p.at[:, IN_DIM + 2].set(b2[0].astype(jnp.float32))    # b2 scalar (whole column)
    return p


@functools.partial(jax.jit, static_argnames=("compute_dtype", "max_tile_b"))
def _policy_forward_impl(s, packed_params, compute_dtype, max_tile_b):
    batch = s.shape[0]
    hidden = packed_params.shape[0]
    tile_b, b_pad, chunk = _choose_tiles(batch, max_tile_b)

    # Lane-dense transposed layout; pad batch to a whole number of lane tiles.
    # (jit-fused with the kernel call; for very large batches keep activations in
    #  [4, B] layout upstream to avoid this extra HBM pass entirely.)
    s_t = jnp.pad(s.astype(compute_dtype).T, ((0, 0), (0, b_pad - batch)))  # [4, b_pad]

    out_t = pl.pallas_call(
        _make_policy_kernel(hidden, tile_b, chunk, compute_dtype),
        out_shape=jax.ShapeDtypeStruct((1, b_pad), jnp.float32),
        grid_spec=pltpu.PrefetchScalarGridSpec(
            num_scalar_prefetch=0,
            grid=(b_pad // tile_b,),
            in_specs=[
                pl.BlockSpec((IN_DIM, tile_b), lambda i: (0, i)),
                pl.BlockSpec((hidden, 8), lambda i: (0, 0)),   # resident across grid
            ],
            out_specs=pl.BlockSpec((1, tile_b), lambda i: (0, i)),
        ),
        compiler_params=pltpu.CompilerParams(
            dimension_semantics=("parallel",)),
    )(s_t, packed_params)

    return out_t[:, :batch].T  # back to [B, 1]


def policy_net_forward(s, packed_params, compute_dtype=None, max_tile_b=8192):
    """tanh(relu(s @ w1 + b1) @ w2 + b2);  s: [B, 4] -> [B, 1] (PyTorch contract).

    `packed_params` comes from pack_params(w1, b1, w2, b2) (build it once).
    """
    if compute_dtype is None:
        compute_dtype = _default_compute_dtype()
    return _policy_forward_impl(s, packed_params, compute_dtype=compute_dtype,
                                max_tile_b=max_tile_b)


def init_params(key, hidden_dim=64):
    """Deterministic init matching PyTorch nn.Linear default U(-1/sqrt(fan_in), .)."""
    k1, k2, k3, k4 = jax.random.split(key, 4)
    bound1 = 1.0 / jnp.sqrt(IN_DIM)
    bound2 = 1.0 / jnp.sqrt(hidden_dim)
    w1 = jax.random.uniform(k1, (IN_DIM, hidden_dim), jnp.float32, -bound1, bound1)
    b1 = jax.random.uniform(k2, (1, hidden_dim), jnp.float32, -bound1, bound1)
    w2 = jax.random.uniform(k3, (hidden_dim, 1), jnp.float32, -bound2, bound2)
    b2 = jax.random.uniform(k4, (1, 1), jnp.float32, -bound2, bound2)
    return w1, b1, w2, b2


if __name__ == "__main__":
    key = jax.random.PRNGKey(0)
    k_params, k_input = jax.random.split(key)

    hidden_dim = 64
    batch = 8  # realistic DDPG-actor batch of CartPole-like states (state_dim = 4)

    w1, b1, w2, b2 = init_params(k_params, hidden_dim)
    packed = pack_params(w1, b1, w2, b2)          # built ONCE, outside the hot path
    s = jax.random.normal(k_input, (batch, IN_DIM), jnp.float32)

    ref = jnp.tanh(jnp.maximum(s @ w1 + b1, 0.0) @ w2 + b2)

    # 1) f32 path: tight correctness check (valid on every TPU generation).
    out_f32 = jax.block_until_ready(policy_net_forward(s, packed, compute_dtype=jnp.float32))
    assert out_f32.shape == (batch, 1)
    assert jnp.allclose(out_f32, ref, atol=1e-5), "f32 mismatch vs reference"

    # 2) auto-dtype path (bf16 layer-1 on v6e/v7x, f32 on v5e): loose tolerance.
    out_auto = jax.block_until_ready(policy_net_forward(s, packed))
    assert jnp.allclose(out_auto, ref, atol=5e-2), "auto-dtype mismatch vs reference"

    # 3) larger batch: exercises multi-step parallel grid (dual-TC on v7x),
    #    the inner 512-lane chunk loop, and batch padding.
    big_batch = 3000
    s_big = jax.random.normal(jax.random.PRNGKey(1), (big_batch, IN_DIM), jnp.float32)
    out_big = jax.block_until_ready(
        policy_net_forward(s_big, packed, compute_dtype=jnp.float32))
    ref_big = jnp.tanh(jnp.maximum(s_big @ w1 + b1, 0.0) @ w2 + b2)
    assert out_big.shape == (big_batch, 1)
    assert jnp.allclose(out_big, ref_big, atol=1e-5), "large-batch mismatch vs reference"

    print("KERNEL_OK")
</pallas_src>

<mosaic_0001>
module attributes {stable_mosaic.version = 11 : i64} {
  func.func @kernel(%arg0: i32, %arg1: memref<4x128xf32, #tpu.memory_space<vmem>>, %arg2: memref<64x8xf32, #tpu.memory_space<vmem>>, %arg3: memref<1x128xf32, #tpu.memory_space<vmem>>) attributes {dimension_semantics = [#tpu.dimension_semantics<parallel>], iteration_bounds = array<i64: 1>, scalar_prefetch = 0 : i64, scratch_operands = 0 : i64, tpu.core_type = #tpu.core_type<tc>, window_params = [{transform_indices = @transform_0, window_bounds = array<i64: 4, 128>}, {pipeline_mode = #tpu.pipeline_mode<synchronous>, transform_indices = @transform_1, window_bounds = array<i64: 64, 8>}, {transform_indices = @transform_2, window_bounds = array<i64: 1, 128>}]} {
    %c0 = arith.constant 0 : index
    %c0_0 = arith.constant 0 : index
    %0 = vector.load %arg2[%c0, %c0_0] : memref<64x8xf32, #tpu.memory_space<vmem>>, vector<64x1xf32>
    %c0_1 = arith.constant 0 : index
    %c1 = arith.constant 1 : index
    %1 = vector.load %arg2[%c0_1, %c1] : memref<64x8xf32, #tpu.memory_space<vmem>>, vector<64x1xf32>
    %c0_2 = arith.constant 0 : index
    %c2 = arith.constant 2 : index
    %2 = vector.load %arg2[%c0_2, %c2] : memref<64x8xf32, #tpu.memory_space<vmem>>, vector<64x1xf32>
    %c0_3 = arith.constant 0 : index
    %c3 = arith.constant 3 : index
    %3 = vector.load %arg2[%c0_3, %c3] : memref<64x8xf32, #tpu.memory_space<vmem>>, vector<64x1xf32>
    %c0_4 = arith.constant 0 : index
    %c4 = arith.constant 4 : index
    %4 = vector.load %arg2[%c0_4, %c4] : memref<64x8xf32, #tpu.memory_space<vmem>>, vector<64x1xf32>
    %c0_5 = arith.constant 0 : index
    %c5 = arith.constant 5 : index
    %5 = vector.load %arg2[%c0_5, %c5] : memref<64x8xf32, #tpu.memory_space<vmem>>, vector<64x1xf32>
    %c0_6 = arith.constant 0 : index
    %c6 = arith.constant 6 : index
    %6 = vector.load %arg2[%c0_6, %c6] : memref<64x8xf32, #tpu.memory_space<vmem>>, vector<1x1xf32>
    %c0_i32 = arith.constant 0 : i32
    %c128_i32 = arith.constant 128 : i32
    %7 = arith.muli %c0_i32, %c128_i32 : i32
    %8 = tpu.assume_multiple %7, 128 : i32
    %c0_7 = arith.constant 0 : index
    %9 = arith.index_cast %8 : i32 to index
    %10 = vector.load %arg1[%c0_7, %9] : memref<4x128xf32, #tpu.memory_space<vmem>>, vector<4x128xf32>
    %11 = vector.extract_strided_slice %10 {offsets = [0, 0], sizes = [1, 128], strides = [1, 1]} : vector<4x128xf32> to vector<1x128xf32>
    %12 = vector.broadcast %0 : vector<64x1xf32> to vector<64x128xf32>
    %13 = vector.broadcast %11 : vector<1x128xf32> to vector<64x128xf32>
    %14 = arith.mulf %12, %13 : vector<64x128xf32>
    %15 = vector.extract_strided_slice %10 {offsets = [1, 0], sizes = [1, 128], strides = [1, 1]} : vector<4x128xf32> to vector<1x128xf32>
    %16 = vector.broadcast %1 : vector<64x1xf32> to vector<64x128xf32>
    %17 = vector.broadcast %15 : vector<1x128xf32> to vector<64x128xf32>
    %18 = arith.mulf %16, %17 : vector<64x128xf32>
    %19 = arith.addf %14, %18 : vector<64x128xf32>
    %20 = vector.extract_strided_slice %10 {offsets = [2, 0], sizes = [1, 128], strides = [1, 1]} : vector<4x128xf32> to vector<1x128xf32>
    %21 = vector.broadcast %2 : vector<64x1xf32> to vector<64x128xf32>
    %22 = vector.broadcast %20 : vector<1x128xf32> to vector<64x128xf32>
    %23 = arith.mulf %21, %22 : vector<64x128xf32>
    %24 = arith.addf %19, %23 : vector<64x128xf32>
    %25 = vector.extract_strided_slice %10 {offsets = [3, 0], sizes = [1, 128], strides = [1, 1]} : vector<4x128xf32> to vector<1x128xf32>
    %26 = vector.broadcast %3 : vector<64x1xf32> to vector<64x128xf32>
    %27 = vector.broadcast %25 : vector<1x128xf32> to vector<64x128xf32>
    %28 = arith.mulf %26, %27 : vector<64x128xf32>
    %29 = arith.addf %24, %28 : vector<64x128xf32>
    %30 = vector.broadcast %4 : vector<64x1xf32> to vector<64x128xf32>
    %31 = arith.addf %29, %30 : vector<64x128xf32>
    %cst = arith.constant 0.000000e+00 : f32
    %32 = vector.broadcast %cst : f32 to vector<64x128xf32>
    %33 = arith.maximumf %31, %32 : vector<64x128xf32>
    %34 = vector.broadcast %5 : vector<64x1xf32> to vector<64x128xf32>
    %35 = arith.mulf %33, %34 : vector<64x128xf32>
    %cst_8 = arith.constant dense<0.000000e+00> : vector<128xf32>
    %36 = vector.multi_reduction <add>, %35, %cst_8 [0] : vector<64x128xf32> to vector<128xf32>
    %37 = vector.shape_cast %36 : vector<128xf32> to vector<1x128xf32>
    %38 = vector.broadcast %6 : vector<1x1xf32> to vector<1x128xf32>
    %39 = arith.addf %37, %38 : vector<1x128xf32>
    %40 = math.tanh %39 : vector<1x128xf32>
    %c0_9 = arith.constant 0 : index
    %41 = arith.index_cast %8 : i32 to index
    %42 = vector.load %arg3[%c0_9, %41] : memref<1x128xf32, #tpu.memory_space<vmem>>, vector<1x128xf32>
    tpu.vector_store %arg3[%c0_9, %41], %40 {strides = array<i32>} : memref<1x128xf32, #tpu.memory_space<vmem>>, vector<1x128xf32>,
    %c1_i32 = arith.constant 1 : i32
    return
  }
  func.func @transform_0(%arg0: i32) -> (i32, i32) {
    %c0_i32 = arith.constant 0 : i32
    %c0_i32_0 = arith.constant 0 : i32
    return %c0_i32, %arg0 : i32, i32
  }
  func.func @transform_1(%arg0: i32) -> (i32, i32) {
    %c0_i32 = arith.constant 0 : i32
    %c0_i32_0 = arith.constant 0 : i32
    %c0_i32_1 = arith.constant 0 : i32
    return %c0_i32, %c0_i32_0 : i32, i32
  }
  func.func @transform_2(%arg0: i32) -> (i32, i32) {
    %c0_i32 = arith.constant 0 : i32
    %c0_i32_0 = arith.constant 0 : i32
    return %c0_i32, %arg0 : i32, i32
  }
}

</mosaic_0001>

<bundles_post_ra>
// kernel: _policy_forward_impl.1
= control target key start
LH: loop header
LB: loop body
LE: loop exit
PB: predicated region body
PF: predicated region fallthrough
CT: control target
= control target key end

     0   :  { %v376_v0 = vmov 0   ;;  %v377_v9 = vmov 1   ;;  %v378_v10 = vmov 2   ;;  %v379_v11 = vmov 4   ;;  %s539_s1 = inlined_call_operand.vmem [shape: f32[64,8], index: 1, kind: input, shape index: {}]   ;;  %s540_s0 = inlined_call_operand.vmem [shape: f32[4,128], index: 0, kind: input, shape index: {}]   ;;  %s541_s2 = inlined_call_operand.vmem [shape: f32[1,128], index: 2, kind: output, shape index: {}]  }
   0x1   :  { %350 = vset.pattern.permute.xlu1 %v376_v0  ;;  %349 = vset.pattern.permute.xlu0 %v376_v0  ;;  %v401_v1 = vld [vmem:[%s539_s1 + $0x10] sm:$0xff]  ;;  %v11_v2 = vld [vmem:[%s539_s1] sm:$0xff]  ;;  %v14_v3 = vld [vmem:[%s539_s1 + $0x18] sm:$0xff]  ;;  %v380_v12 = vmov 3   ;;  %v381_v13 = vmov 5   ;;  %v382_v14 = vmov 6   ;;  %v61_v19 = vlaneseq }
   0x2   :  { %33 = vperm.xlu1 %350, %v401_v1   ;;  %23 = vperm.xlu0 %349, %v11_v2   ;;  %v12_v4 = vld [vmem:[%s539_s1 + $0x8] sm:$0xff]  ;;  %v421_v6 = vld [vmem:[%s539_s1 + $0x20] sm:$0xff]  ;;  %v18_v7 = vld [vmem:[%s539_s1 + $0x38] sm:$0xff] }
   0x3   :  { %v416_v5 = vld [vmem:[%s539_s1 + $0x28] sm:$0xff]  ;;  %v431_v8 = vld [vmem:[%s539_s1 + $0x30] sm:$0xff]  ;;  %v19_v15 = vld [vmem:[%s539_s1] sm:$0x1]  ;;  %v62_v22 = vshrl.u32 %v61_v19, 7 }
   0x4   :  { %v20_v26 = vld [vmem:[%s540_s0] sm:$0xf] }
   0x5   :  { %v63_v24 = vsub.s32 0, %v62_v22  ;;  %v107_v27 = vsub.s32 1, %v62_v22  ;;  %v159_v56 = vsub.s32 2, %v62_v22  ;;  %v211_v58 = vsub.s32 3, %v62_v22 }
   0x6   :  { %38 = vperm.xlu1 %350, %v14_v3   ;;  %28 = vperm.xlu0 %349, %v12_v4  }
   0x7   :  { %v466_v29 = vrot.slane %v20_v26, %v63_v24  ;;  %v470_v31 = vrot.slane %v20_v26, %v107_v27  ;;  %v490_v62 = vrot.slane %v20_v26, %v159_v56 }
   0xa   :  { %48 = vperm.xlu1 %350, %v416_v5   ;;  %43 = vperm.xlu0 %349, %v421_v6  }
   0xe   :  { %58 = vperm.xlu1 %350, %v18_v7   ;;  %53 = vperm.xlu0 %349, %v431_v8  }
  0x12   :  { %352 = vset.pattern.permute.xlu1 %v377_v9  ;;  %351 = vset.pattern.permute.xlu0 %v377_v9 }
  0x13   :  { %78 = vperm.xlu1 %352, %v12_v4   ;;  %74 = vperm.xlu0 %351, %v11_v2  }
  0x17   :  { %82 = vperm.xlu1 %352, %v401_v1   ;;  %86 = vperm.xlu0 %351, %v14_v3  }
  0x1b   :  { %90 = vperm.xlu1 %352, %v421_v6   ;;  %94 = vperm.xlu0 %351, %v416_v5  }
  0x1f   :  { %98 = vperm.xlu1 %352, %v431_v8   ;;  %102 = vperm.xlu0 %351, %v18_v7  }
  0x23   :  { %353 = vset.pattern.permute.xlu1 %v378_v10  ;;  %354 = vset.pattern.permute.xlu0 %v378_v10 }
  0x24   :  { %126 = vperm.xlu1 %353, %v11_v2   ;;  %130 = vperm.xlu0 %354, %v12_v4  }
  0x28   :  { %134 = vperm.xlu1 %353, %v401_v1   ;;  %142 = vperm.xlu0 %354, %v421_v6  }
  0x2c   :  { %138 = vperm.xlu1 %353, %v14_v3   ;;  %356 = vset.pattern.permute.xlu0 %v379_v11 }
  0x2d   :  { %230 = vperm.xlu0 %356, %v11_v2  }
  0x30   :  { %355 = vset.pattern.permute.xlu1 %v380_v12 }
  0x31   :  { %178 = vperm.xlu1 %355, %v11_v2   ;;  %357 = vset.pattern.permute.xlu0 %v380_v12 }
  0x32   :  { %182 = vperm.xlu0 %357, %v12_v4  }
  0x35   :  { %186 = vperm.xlu1 %355, %v401_v1  }
  0x36   :  { %194 = vperm.xlu0 %357, %v421_v6  }
  0x39   :  { %190 = vperm.xlu1 %355, %v14_v3  }
  0x3a   :  { %198 = vperm.xlu0 %357, %v416_v5  }
  0x3d   :  { %358 = vset.pattern.permute.xlu1 %v379_v11 }
  0x3e   :  { %234 = vperm.xlu1 %358, %v12_v4   ;;  %202 = vperm.xlu0 %357, %v431_v8  }
  0x42   :  { %359 = vset.pattern.permute.xlu1 %v378_v10  ;;  %206 = vperm.xlu0 %357, %v18_v7  }
  0x43   :  { %146 = vperm.xlu1 %359, %v416_v5  }
  0x46   :  { %367 = vset.pattern.permute.xlu0 %v381_v13 }
  0x47   :  { %360 = vset.pattern.permute.xlu1 %v379_v11  ;;  %278 = vperm.xlu0 %367, %v11_v2   ;;  %v494_v2 = vrot.slane %v20_v26, %v211_v58 }
  0x48   :  { %238 = vperm.xlu1 %360, %v401_v1  }
  0x4b   :  { %290 = vperm.xlu0 %367, %v14_v3  }
  0x4c   :  { %361 = vset.pattern.permute.xlu1 %v378_v10 }
  0x4d   :  { %150 = vperm.xlu1 %361, %v431_v8  }
  0x4f   :  { %370 = vset.pattern.permute.xlu0 %v379_v11 }
  0x50   :  { %258 = vperm.xlu0 %370, %v18_v7  }
  0x51   :  { %362 = vset.pattern.permute.xlu1 %v379_v11 }
  0x52   :  { %242 = vperm.xlu1 %362, %v14_v3  }
  0x54   :  { %371 = vset.pattern.permute.xlu0 %v381_v13 }
  0x55   :  { %306 = vperm.xlu0 %371, %v18_v7  }
  0x56   :  { %363 = vset.pattern.permute.xlu1 %v381_v13 }
  0x57   :  { %282 = vperm.xlu1 %363, %v12_v4  }
  0x59   :  { %373 = vset.pattern.permute.xlu0 %v382_v14 }
  0x5b   :  { %364 = vset.pattern.permute.xlu1 %v378_v10 }
  0x5c   :  { %154 = vperm.xlu1 %364, %v18_v7  }
  0x60   :  { %365 = vset.pattern.permute.xlu1 %v379_v11 }
  0x61   :  { %246 = vperm.xlu1 %365, %v421_v6  }
  0x65   :  { %366 = vset.pattern.permute.xlu1 %v381_v13 }
  0x66   :  { %286 = vperm.xlu1 %366, %v401_v1  }
  0x6a   :  { %368 = vset.pattern.permute.xlu1 %v379_v11 }
  0x6b   :  { %250 = vperm.xlu1 %368, %v416_v5  }
  0x6f   :  { %254 = vperm.xlu1 %368, %v431_v8  }
  0x73   :  { %369 = vset.pattern.permute.xlu1 %v381_v13 }
  0x74   :  { %294 = vperm.xlu1 %369, %v421_v6  }
  0x78   :  { %298 = vperm.xlu1 %369, %v416_v5  }
  0x7c   :  { %302 = vperm.xlu1 %369, %v431_v8  }
  0x80   :  { %372 = vset.pattern.permute.xlu1 %v382_v14 }
  0x81   :  { %v34_v16 = vpop.permute.xlu1 %33  ;;  %332 = vperm.xlu1 %372, %v19_v15   ;;  %v24_v17 = vpop.permute.xlu0 %23 }
  0x82   :  { %v67_v33 = vmul.f32 %v466_v29, %v34_v16  ;;  %v65_v60 = vmul.f32 %v466_v29, %v24_v17 }
  0x85   :  { %v39_v18 = vpop.permute.xlu1 %38  ;;  %v29_v20 = vpop.permute.xlu0 %28 }
  0x86   :  { %v66_v0 = vmul.f32 %v466_v29, %v29_v20  ;;  %v68_v12 = vmul.f32 %v466_v29, %v39_v18 }
  0x89   :  { %v457_v21 = vpop.permute.xlu1 %48  ;;  %v461_v25 = vpop.permute.xlu0 %43 }
  0x8d   :  { %v459_v23 = vpop.permute.xlu1 %58  ;;  %v468_v30 = vpop.permute.xlu0 %53 }
  0x92   :  { %v79_v28 = vpop.permute.xlu1 %78  ;;  %v75_v37 = vpop.permute.xlu0 %74 }
  0x93   :  { %v109_v61 = vmul.f32 %v470_v31, %v75_v37  ;;  %v110_v1 = vmul.f32 %v470_v31, %v79_v28 }
  0x95   :  { %v117_v3 = vadd.f32 %v109_v61, %v65_v60  ;;  %v118_v8 = vadd.f32 %v110_v1, %v66_v0  ;;  %v70_v0 = vmul.f32 %v466_v29, %v457_v21 }
  0x96   :  { %v83_v32 = vpop.permute.xlu1 %82  ;;  %v87_v39 = vpop.permute.xlu0 %86 }
  0x97   :  { %v111_v34 = vmul.f32 %v470_v31, %v83_v32  ;;  %v112_v6 = vmul.f32 %v470_v31, %v87_v39 }
  0x99   :  { %v119_v35 = vadd.f32 %v111_v34, %v67_v33  ;;  %v120_v17 = vadd.f32 %v112_v6, %v68_v12 }
  0x9a   :  { %v474_v36 = vpop.permute.xlu1 %90  ;;  %v478_v41 = vpop.permute.xlu0 %94 }
  0x9e   :  { %v476_v38 = vpop.permute.xlu1 %98  ;;  %v480_v44 = vpop.permute.xlu0 %102 }
  0x9f   :  { %v115_v21 = vmul.f32 %v470_v31, %v476_v38 }
  0xa3   :  { %v127_v40 = vpop.permute.xlu1 %126  ;;  %v131_v46 = vpop.permute.xlu0 %130 }
  0xa4   :  { %v161_v4 = vmul.f32 %v490_v62, %v127_v40  ;;  %v162_v5 = vmul.f32 %v490_v62, %v131_v46 }
  0xa6   :  { %v169_v13 = vadd.f32 %v161_v4, %v117_v3  ;;  %v170_v14 = vadd.f32 %v162_v5, %v118_v8  ;;  %v72_v5 = vmul.f32 %v466_v29, %v459_v23 }
  0xa7   :  { %v135_v42 = vpop.permute.xlu1 %134  ;;  %v143_v49 = vpop.permute.xlu0 %142 }
  0xa8   :  { %v163_v15 = vmul.f32 %v490_v62, %v135_v42 }
  0xaa   :  { %v171_v28 = vadd.f32 %v163_v15, %v119_v35 }
  0xab   :  { %v139_v43 = vpop.permute.xlu1 %138 }
  0xac   :  { %v231_v50 = vpop.permute.xlu0 %230  ;;  %v164_v16 = vmul.f32 %v490_v62, %v139_v43 }
  0xae   :  { %v172_v32 = vadd.f32 %v164_v16, %v120_v17 }
  0xb0   :  { %v179_v45 = vpop.permute.xlu1 %178 }
  0xb1   :  { %v183_v53 = vpop.permute.xlu0 %182  ;;  %v213_v9 = vmul.f32 %v494_v2, %v179_v45 }
  0xb2   :  { %v214_v10 = vmul.f32 %v494_v2, %v183_v53 }
  0xb3   :  { %v221_v19 = vadd.f32 %v213_v9, %v169_v13 }
  0xb4   :  { %v187_v47 = vpop.permute.xlu1 %186  ;;  %v222_v24 = vadd.f32 %v214_v10, %v170_v14 }
  0xb5   :  { %v195_v55 = vpop.permute.xlu0 %194  ;;  %v215_v20 = vmul.f32 %v494_v2, %v187_v47  ;;  %v261_v34 = vadd.f32 %v231_v50, %v221_v19  ;;  %v69_v47 = vmul.f32 %v466_v29, %v461_v25  ;;  %v114_v50 = vmul.f32 %v470_v31, %v478_v41 }
  0xb6   :  { %v116_v25 = vmul.f32 %v470_v31, %v480_v44 }
  0xb7   :  { %v223_v18 = vadd.f32 %v215_v20, %v171_v28  ;;  %v269_v46 = vmax.f32 %v261_v34, 0.0  ;;  %v122_v6 = vadd.f32 %v114_v50, %v70_v0 }
  0xb8   :  { %v191_v48 = vpop.permute.xlu1 %190  ;;  %v124_v10 = vadd.f32 %v116_v25, %v72_v5 }
  0xb9   :  { %v486_v59 = vpop.permute.xlu0 %198  ;;  %v216_v22 = vmul.f32 %v494_v2, %v191_v48  ;;  %v113_v48 = vmul.f32 %v470_v31, %v474_v36  ;;  %v217_v36 = vmul.f32 %v494_v2, %v195_v55 }
  0xbb   :  { %v224_v37 = vadd.f32 %v216_v22, %v172_v32  ;;  %v121_v1 = vadd.f32 %v113_v48, %v69_v47 }
  0xbd   :  { %v235_v51 = vpop.permute.xlu1 %234  ;;  %v499_v7 = vpop.permute.xlu0 %202 }
  0xbe   :  { %v262_v33 = vadd.f32 %v235_v51, %v222_v24  ;;  %v219_v31 = vmul.f32 %v494_v2, %v499_v7 }
  0xc0   :  { %v270_v39 = vmax.f32 %v262_v33, 0.0 }
  0xc1   :  { %v207_v26 = vpop.permute.xlu0 %206 }
  0xc2   :  { %v482_v52 = vpop.permute.xlu1 %146  ;;  %v220_v38 = vmul.f32 %v494_v2, %v207_v26 }
  0xc3   :  { %v166_v3 = vmul.f32 %v490_v62, %v482_v52  ;;  %v218_v52 = vmul.f32 %v494_v2, %v486_v59 }
  0xc6   :  { %v279_v43 = vpop.permute.xlu0 %278 }
  0xc7   :  { %v239_v54 = vpop.permute.xlu1 %238  ;;  %v309_v56 = vmul.f32 %v279_v43, %v269_v46 }
  0xc8   :  { %v263_v40 = vadd.f32 %v239_v54, %v223_v18  ;;  %v165_v54 = vmul.f32 %v490_v62, %v143_v49  ;;  %v71_v49 = vmul.f32 %v466_v29, %v468_v30 }
  0xca   :  { %v271_v35 = vmax.f32 %v263_v40, 0.0  ;;  %v291_v51 = vpop.permute.xlu0 %290  ;;  %v173_v8 = vadd.f32 %v165_v54, %v121_v1  ;;  %v123_v13 = vadd.f32 %v115_v21, %v71_v49 }
  0xcc   :  { %v484_v57 = vpop.permute.xlu1 %150  ;;  %v225_v12 = vadd.f32 %v217_v36, %v173_v8 }
  0xcd   :  { %v167_v23 = vmul.f32 %v490_v62, %v484_v57 }
  0xcf   :  { %v175_v15 = vadd.f32 %v167_v23, %v123_v13  ;;  %v259_v59 = vpop.permute.xlu0 %258 }
  0xd1   :  { %v243_v63 = vpop.permute.xlu1 %242  ;;  %v227_v24 = vadd.f32 %v219_v31, %v175_v15 }
  0xd2   :  { %v264_v42 = vadd.f32 %v243_v63, %v224_v37 }
  0xd4   :  { %v272_v58 = vmax.f32 %v264_v42, 0.0 }
  0xd6   :  { %v283_v11 = vpop.permute.xlu1 %282  ;;  %v312_v4 = vmul.f32 %v291_v51, %v272_v58 }
  0xd7   :  { %v310_v53 = vmul.f32 %v283_v11, %v270_v39  ;;  %v174_v11 = vadd.f32 %v166_v3, %v122_v6  ;;  %v307_v39 = vpop.permute.xlu0 %306 }
  0xd9   :  { %v317_v61 = vadd.f32 %v310_v53, %v309_v56  ;;  %v226_v16 = vadd.f32 %v218_v52, %v174_v11 }
  0xdb   :  { %v155_v27 = vpop.permute.xlu1 %154 }
  0xdc   :  { %v168_v44 = vmul.f32 %v490_v62, %v155_v27 }
  0xde   :  { %v176_v29 = vadd.f32 %v168_v44, %v124_v10 }
  0xe0   :  { %v247_v45 = vpop.permute.xlu1 %246  ;;  %v228_v19 = vadd.f32 %v220_v38, %v176_v29 }
  0xe1   :  { %v265_v30 = vadd.f32 %v247_v45, %v225_v12 }
  0xe2   :  { %v268_v57 = vadd.f32 %v259_v59, %v228_v19 }
  0xe3   :  { %v273_v17 = vmax.f32 %v265_v30, 0.0 }
  0xe4   :  { %v276_v18 = vmax.f32 %v268_v57, 0.0 }
  0xe5   :  { %v287_v60 = vpop.permute.xlu1 %286 }
  0xe6   :  { %v311_v63 = vmul.f32 %v287_v60, %v271_v35  ;;  %v316_v40 = vmul.f32 %v307_v39, %v276_v18 }
  0xe8   :  { %v318_v41 = vadd.f32 %v317_v61, %v311_v63 }
  0xea   :  { %v251_v9 = vpop.permute.xlu1 %250  ;;  %v319_v55 = vadd.f32 %v318_v41, %v312_v4 }
  0xeb   :  { %v266_v20 = vadd.f32 %v251_v9, %v226_v16 }
  0xed   :  { %v274_v62 = vmax.f32 %v266_v20, 0.0 }
  0xee   :  { %v255_v14 = vpop.permute.xlu1 %254 }
  0xef   :  { %v267_v28 = vadd.f32 %v255_v14, %v227_v24 }
  0xf1   :  { %v275_v37 = vmax.f32 %v267_v28, 0.0 }
  0xf3   :  { %v295_v22 = vpop.permute.xlu1 %294 }
  0xf4   :  { %v313_v27 = vmul.f32 %v295_v22, %v273_v17 }
  0xf6   :  { %v320_v32 = vadd.f32 %v319_v55, %v313_v27 }
  0xf7   :  { %v299_v33 = vpop.permute.xlu1 %298 }
  0xf8   :  { %v314_v34 = vmul.f32 %v299_v33, %v274_v62 }
  0xfa   :  { %v321_v7 = vadd.f32 %v320_v32, %v314_v34 }
  0xfb   :  { %v303_v2 = vpop.permute.xlu1 %302 }
  0xfc   :  { %v315_v26 = vmul.f32 %v303_v2, %v275_v37 }
  0xfe   :  { %v322_v42 = vadd.f32 %v321_v7, %v315_v26 }
 0x100   :  { %v323_v45 = vadd.f32 %v322_v42, %v316_v40  ;;  %v333_v56 = vpop.permute.xlu1 %332 }
 0x102   :  { %v324_v43 = vrot.slane %v323_v45, 4 }
 0x104   :  { %v325_v46 = vadd.f32 %v324_v43, %v323_v45 }
 0x106   :  { %v326_v53 = vrot.slane %v325_v46, 2 }
 0x108   :  { %v327_v47 = vadd.f32 %v326_v53, %v325_v46 }
 0x10a   :  { %v328_v48 = vrot.slane %v327_v47, 1 }
 0x10c   :  { %v329_v35 = vadd.f32 %v328_v48, %v327_v47 }
 0x10e   :  { %v335_v58 = vadd.f32 %v333_v56, %v329_v35 }
 0x110   :  { %374 = vtanh.f32 %v335_v58 }
 0x11a   :  { %v375_v50 = vpop.eup %374 }
 0x11b   :  { %337 = vst [vmem:[%s541_s2] sm:$0x1] %v375_v50 }

</bundles_post_ra>
